<compile_context>
chip_gen: v6e
topology: v6e:2x2x1
jax: 0.10.0
libtpu: 0.0.40
codegen_flags: <defaults>
</compile_context>

<pallas_src>
import functools

import jax
import jax.numpy as jnp
from jax.experimental import pallas as pl
from jax.experimental.pallas import tpu as pltpu

GAMMA = 1.5
EPS = 1e-5

_MAX_ROW_TILE = 256                    # sublane-axis tile cap (multiple of 8)
_TARGET_BLOCK_BYTES = 2 * 1024 * 1024  # ~2 MiB per input block


def _nrd_partial_kernel(p_ref, y_ref, numer_ref, denom_ref, num_acc, den_acc,
                        *, n_cols, mask_cols):
    """Accumulates per-row partial numer/denom over the spatial grid axis."""
    s = pl.program_id(1)

    @pl.when(s == 0)
    def _():
        num_acc[...] = jnp.zeros_like(num_acc)
        den_acc[...] = jnp.zeros_like(den_acc)

    p = p_ref[...].astype(jnp.float32)
    y = y_ref[...].astype(jnp.float32)

    if mask_cols:
        tile_r, tile_s = p.shape
        col = s * tile_s + jax.lax.broadcasted_iota(
            jnp.int32, (tile_r, tile_s), 1)
        valid = col < n_cols
        p = jnp.where(valid, p, 0.0)
        y = jnp.where(valid, y, 0.0)

    d = jnp.abs(p - y)
    # |p - y| ** 1.5  ==  d * sqrt(d)  (exact for gamma = 1.5, safe at d = 0)
    num_acc[...] += jnp.sum(d * jnp.sqrt(d), axis=1, keepdims=True)
    den_acc[...] += jnp.sum(p + y, axis=1, keepdims=True)

    @pl.when(s == pl.num_programs(1) - 1)
    def _():
        numer_ref[...] = num_acc[...]
        denom_ref[...] = den_acc[...]


def _choose_tiles(R, S, itemsize):
    """Pick (tile_r, grid_r, R_pad, tile_s, grid_s) for an HBM-bound sweep."""
    if R <= _MAX_ROW_TILE:
        tile_r, grid_r, r_pad = R, 1, R
    else:
        tile_r = _MAX_ROW_TILE
        grid_r = pl.cdiv(R, tile_r)
        r_pad = grid_r * tile_r

    target_elems = max(_TARGET_BLOCK_BYTES // max(itemsize, 1), 128)
    ts = max(128, (target_elems // max(tile_r, 1)) // 128 * 128)
    if S <= ts:
        tile_s, grid_s = S, 1          # full spatial dim in one lane-dense tile
    else:
        tile_s, grid_s = ts, pl.cdiv(S, ts)
    return tile_r, grid_r, r_pad, tile_s, grid_s


def noise_robust_dice_loss(predict, soft_y):
    """Noise-robust Dice loss (gamma = 1.5). Returns a scalar float32."""
    if isinstance(predict, (list, tuple)):
        predict = predict[0]

    shape = predict.shape
    ndim = len(shape)
    if ndim not in (4, 5):
        raise ValueError(f"{ndim}D tensor not supported")
    N, C = int(shape[0]), int(shape[1])
    S = 1
    for d in shape[2:]:
        S *= int(d)
    R = N * C

    # Zero-cost reshapes: keep NCHW layout, rows = (n, c), cols = spatial.
    p2d = jnp.reshape(predict, (R, S))
    y2d = jnp.reshape(soft_y, (R, S))

    itemsize = max(jnp.dtype(p2d.dtype).itemsize, jnp.dtype(y2d.dtype).itemsize)
    tile_r, grid_r, r_pad, tile_s, grid_s = _choose_tiles(R, S, itemsize)
    mask_cols = (S % tile_s) != 0

    kernel = functools.partial(_nrd_partial_kernel, n_cols=S,
                               mask_cols=mask_cols)

    bytes_accessed = (p2d.size * jnp.dtype(p2d.dtype).itemsize
                      + y2d.size * jnp.dtype(y2d.dtype).itemsize
                      + 2 * r_pad * 4)
    cost = pl.CostEstimate(flops=7 * R * S, transcendentals=R * S,
                           bytes_accessed=bytes_accessed)

    numer_rows, denom_rows = pl.pallas_call(
        kernel,
        out_shape=(jax.ShapeDtypeStruct((r_pad, 1), jnp.float32),
                   jax.ShapeDtypeStruct((r_pad, 1), jnp.float32)),
        grid_spec=pltpu.PrefetchScalarGridSpec(
            num_scalar_prefetch=0,
            grid=(grid_r, grid_s),
            in_specs=[
                pl.BlockSpec((tile_r, tile_s), lambda r, s: (r, s)),
                pl.BlockSpec((tile_r, tile_s), lambda r, s: (r, s)),
            ],
            out_specs=[
                pl.BlockSpec((tile_r, 1), lambda r, s: (r, 0)),
                pl.BlockSpec((tile_r, 1), lambda r, s: (r, 0)),
            ],
            scratch_shapes=[
                pltpu.VMEM((tile_r, 1), jnp.float32),  # numer accumulator
                pltpu.VMEM((tile_r, 1), jnp.float32),  # denom accumulator
            ],
        ),
        compiler_params=pltpu.CompilerParams(
            dimension_semantics=("parallel", "arbitrary"),
        ),
        cost_estimate=cost,
    )(p2d, y2d)

    # Tiny JAX epilogue on R = N*C scalars: fold batch into class, divide, mean.
    numer_c = numer_rows[:R, 0].reshape(N, C).sum(axis=0)
    denom_c = denom_rows[:R, 0].reshape(N, C).sum(axis=0)
    return jnp.mean(numer_c / (denom_c + EPS))


# ----------------------------- reference ------------------------------------


def _reshape_tensor_to_2d(x):
    """[N, C, D, H, W] or [N, C, H, W] -> [V, C] (channel-last, flattened)."""
    ndim = x.ndim
    num_class = x.shape[1]
    if ndim == 5:
        x_perm = jnp.transpose(x, (0, 2, 3, 4, 1))
    elif ndim == 4:
        x_perm = jnp.transpose(x, (0, 2, 3, 1))
    else:
        raise ValueError(f"{ndim}D tensor not supported")
    return jnp.reshape(x_perm, (-1, num_class))


def _reference_loss(predict, soft_y):
    p = _reshape_tensor_to_2d(predict).astype(jnp.float32)
    y = _reshape_tensor_to_2d(soft_y).astype(jnp.float32)
    numer = jnp.sum(jnp.abs(p - y) ** GAMMA, axis=0)
    denom = jnp.sum(p + y, axis=0)
    return jnp.mean(numer / (denom + EPS))


if __name__ == "__main__":
    key = jax.random.PRNGKey(0)
    k1, k2 = jax.random.split(key)

    N, C, H, W = 2, 4, 16, 16
    # predict: softmax-like probabilities; soft_y: one-hot soft labels
    logits = jax.random.normal(k1, (N, C, H, W), dtype=jnp.float32)
    predict = jax.nn.softmax(logits, axis=1)
    labels = jax.random.randint(k2, (N, H, W), 0, C)
    soft_y = jnp.transpose(jax.nn.one_hot(labels, C, dtype=jnp.float32),
                           (0, 3, 1, 2))

    loss = noise_robust_dice_loss(predict, soft_y)
    jax.block_until_ready(loss)

    ref = _reference_loss(predict, soft_y)
    assert jnp.allclose(loss, ref, rtol=1e-5, atol=1e-6), (loss, ref)

    print("KERNEL_OK")
</pallas_src>

<mosaic_0001>
module attributes {stable_mosaic.version = 11 : i64} {
  func.func @_nrd_partial_kernel(%arg0: i32, %arg1: i32, %arg2: memref<8x256xf32, #tpu.memory_space<vmem>>, %arg3: memref<8x256xf32, #tpu.memory_space<vmem>>, %arg4: memref<8x1xf32, #tpu.memory_space<vmem>>, %arg5: memref<8x1xf32, #tpu.memory_space<vmem>>, %arg6: memref<8x1xf32, #tpu.memory_space<vmem>>, %arg7: memref<8x1xf32, #tpu.memory_space<vmem>>) attributes {dimension_semantics = [#tpu.dimension_semantics<parallel>, #tpu.dimension_semantics<arbitrary>], iteration_bounds = array<i64: 1, 1>, scalar_prefetch = 0 : i64, scratch_operands = 2 : i64, tpu.core_type = #tpu.core_type<tc>, window_params = [{transform_indices = @transform_0, window_bounds = array<i64: 8, 256>}, {transform_indices = @transform_1, window_bounds = array<i64: 8, 256>}, {transform_indices = @transform_2, window_bounds = array<i64: 8, 1>}, {transform_indices = @transform_3, window_bounds = array<i64: 8, 1>}]} {
    %c0_i32 = arith.constant 0 : i32
    %0 = arith.cmpi eq, %arg1, %c0_i32 : i32
    %1 = arith.extui %0 : i1 to i32
    %c0_i32_0 = arith.constant 0 : i32
    %2 = arith.cmpi ne, %1, %c0_i32_0 : i32
    scf.if %2 {
      %cst_15 = arith.constant 0.000000e+00 : f32
      %23 = vector.broadcast %cst_15 : f32 to vector<8x1xf32>
      %c0_16 = arith.constant 0 : index
      %c0_17 = arith.constant 0 : index
      %24 = vector.load %arg6[%c0_16, %c0_17] : memref<8x1xf32, #tpu.memory_space<vmem>>, vector<8x1xf32>
      tpu.vector_store %arg6[%c0_16, %c0_17], %23 {strides = array<i32>} : memref<8x1xf32, #tpu.memory_space<vmem>>, vector<8x1xf32>,
      %cst_18 = arith.constant 0.000000e+00 : f32
      %25 = vector.broadcast %cst_18 : f32 to vector<8x1xf32>
      %c0_19 = arith.constant 0 : index
      %c0_20 = arith.constant 0 : index
      %26 = vector.load %arg7[%c0_19, %c0_20] : memref<8x1xf32, #tpu.memory_space<vmem>>, vector<8x1xf32>
      tpu.vector_store %arg7[%c0_19, %c0_20], %25 {strides = array<i32>} : memref<8x1xf32, #tpu.memory_space<vmem>>, vector<8x1xf32>,
    } else {
    }
    %c0 = arith.constant 0 : index
    %c0_1 = arith.constant 0 : index
    %3 = vector.load %arg2[%c0, %c0_1] : memref<8x256xf32, #tpu.memory_space<vmem>>, vector<8x256xf32>
    %c0_2 = arith.constant 0 : index
    %c0_3 = arith.constant 0 : index
    %4 = vector.load %arg3[%c0_2, %c0_3] : memref<8x256xf32, #tpu.memory_space<vmem>>, vector<8x256xf32>
    %5 = arith.subf %3, %4 : vector<8x256xf32>
    %6 = math.absf %5 : vector<8x256xf32>
    %c0_4 = arith.constant 0 : index
    %c0_5 = arith.constant 0 : index
    %7 = vector.load %arg6[%c0_4, %c0_5] : memref<8x1xf32, #tpu.memory_space<vmem>>, vector<8x1xf32>
    %8 = math.sqrt %6 : vector<8x256xf32>
    %9 = arith.mulf %6, %8 : vector<8x256xf32>
    %cst = arith.constant dense<0.000000e+00> : vector<8xf32>
    %10 = vector.multi_reduction <add>, %9, %cst [1] : vector<8x256xf32> to vector<8xf32>
    %11 = vector.shape_cast %10 : vector<8xf32> to vector<8x1xf32>
    %12 = arith.addf %7, %11 : vector<8x1xf32>
    %c0_6 = arith.constant 0 : index
    %c0_7 = arith.constant 0 : index
    %13 = vector.load %arg6[%c0_6, %c0_7] : memref<8x1xf32, #tpu.memory_space<vmem>>, vector<8x1xf32>
    tpu.vector_store %arg6[%c0_6, %c0_7], %12 {strides = array<i32>} : memref<8x1xf32, #tpu.memory_space<vmem>>, vector<8x1xf32>,
    %c0_8 = arith.constant 0 : index
    %c0_9 = arith.constant 0 : index
    %14 = vector.load %arg7[%c0_8, %c0_9] : memref<8x1xf32, #tpu.memory_space<vmem>>, vector<8x1xf32>
    %15 = arith.addf %3, %4 : vector<8x256xf32>
    %cst_10 = arith.constant dense<0.000000e+00> : vector<8xf32>
    %16 = vector.multi_reduction <add>, %15, %cst_10 [1] : vector<8x256xf32> to vector<8xf32>
    %17 = vector.shape_cast %16 : vector<8xf32> to vector<8x1xf32>
    %18 = arith.addf %14, %17 : vector<8x1xf32>
    %c0_11 = arith.constant 0 : index
    %c0_12 = arith.constant 0 : index
    %19 = vector.load %arg7[%c0_11, %c0_12] : memref<8x1xf32, #tpu.memory_space<vmem>>, vector<8x1xf32>
    tpu.vector_store %arg7[%c0_11, %c0_12], %18 {strides = array<i32>} : memref<8x1xf32, #tpu.memory_space<vmem>>, vector<8x1xf32>,
    %c0_i32_13 = arith.constant 0 : i32
    %20 = arith.cmpi eq, %arg1, %c0_i32_13 : i32
    %21 = arith.extui %20 : i1 to i32
    %c0_i32_14 = arith.constant 0 : i32
    %22 = arith.cmpi ne, %21, %c0_i32_14 : i32
    scf.if %22 {
      %c0_15 = arith.constant 0 : index
      %c0_16 = arith.constant 0 : index
      %23 = vector.load %arg6[%c0_15, %c0_16] : memref<8x1xf32, #tpu.memory_space<vmem>>, vector<8x1xf32>
      %c0_17 = arith.constant 0 : index
      %c0_18 = arith.constant 0 : index
      %24 = vector.load %arg4[%c0_17, %c0_18] : memref<8x1xf32, #tpu.memory_space<vmem>>, vector<8x1xf32>
      tpu.vector_store %arg4[%c0_17, %c0_18], %23 {strides = array<i32>} : memref<8x1xf32, #tpu.memory_space<vmem>>, vector<8x1xf32>,
      %c0_19 = arith.constant 0 : index
      %c0_20 = arith.constant 0 : index
      %25 = vector.load %arg7[%c0_19, %c0_20] : memref<8x1xf32, #tpu.memory_space<vmem>>, vector<8x1xf32>
      %c0_21 = arith.constant 0 : index
      %c0_22 = arith.constant 0 : index
      %26 = vector.load %arg5[%c0_21, %c0_22] : memref<8x1xf32, #tpu.memory_space<vmem>>, vector<8x1xf32>
      tpu.vector_store %arg5[%c0_21, %c0_22], %25 {strides = array<i32>} : memref<8x1xf32, #tpu.memory_space<vmem>>, vector<8x1xf32>,
    } else {
    }
    return
  }
  func.func @transform_0(%arg0: i32, %arg1: i32) -> (i32, i32) {
    %c0_i32 = arith.constant 0 : i32
    return %arg0, %arg1 : i32, i32
  }
  func.func @transform_1(%arg0: i32, %arg1: i32) -> (i32, i32) {
    %c0_i32 = arith.constant 0 : i32
    return %arg0, %arg1 : i32, i32
  }
  func.func @transform_2(%arg0: i32, %arg1: i32) -> (i32, i32) {
    %c0_i32 = arith.constant 0 : i32
    %c0_i32_0 = arith.constant 0 : i32
    return %arg0, %c0_i32 : i32, i32
  }
  func.func @transform_3(%arg0: i32, %arg1: i32) -> (i32, i32) {
    %c0_i32 = arith.constant 0 : i32
    %c0_i32_0 = arith.constant 0 : i32
    return %arg0, %c0_i32 : i32, i32
  }
}

</mosaic_0001>

<bundles_post_ra>
// kernel: tpu_custom_call.1
= control target key start
LH: loop header
LB: loop body
LE: loop exit
PB: predicated region body
PF: predicated region fallthrough
CT: control target
= control target key end

     0   :  { %9 = vsyncpa [#allocation5], 0  ;;  %s192_s0 = inlined_call_operand.hbm [shape: f32[8,256], index: 0, kind: input, shape index: {}]   ;;  %s193_s1 = inlined_call_operand.hbm [shape: f32[8,256], index: 1, kind: input, shape index: {}]   ;;  %s194_s2 = inlined_call_operand.vmem [shape: f32[8,1], index: 2, kind: output, shape index: {0}]   ;;  %s195_s3 = inlined_call_operand.vmem [shape: f32[8,1], index: 3, kind: output, shape index: {1}]  }
   0x1   :  { %10 = vsyncpa [#allocation7], 0  ;;  %s151_s12 = smov [#allocation4]   ;;  %s152_s14 = smov [#allocation6]  }
   0x2   :  { %s17_s13 = sshll.u32 %s151_s12, 4  ;;  %s27_s15 = sshll.u32 %s152_s14, 4  ;;  %s18_s13 = int_to_ptr.vmem [resolvable:$true] %s17_s13  ;;  %s28_s15 = int_to_ptr.vmem [resolvable:$true] %s27_s15 }
   0x3   :  { %s115_s16 = scalar_lea.vmem %s18_s13, 256  ;;  %p120_p1 = scmp.lt.s32.totalorder %s18_s13, %s18_s13 }
   0x4   :  { %p116_p0 = scmp.ne.s32.totalorder %s18_s13, %s115_s16  ;;  %p121_p2 = scmp.lt.s32.totalorder %s115_s16, %s115_s16 }
   0x6   :  { %p122_p3 = por %p121_p2, %p120_p1 }
   0x8   :  { %p123_p4 = pnand %p122_p3, %p116_p0 }
   0xa   :  { %126 = shalt.err (!%p123_p4)
}
   0xb   :  { %20 = dma.hbm_to_vmem [thread:$0]  %s192_s0, 256, %s18_s13, [#allocation5]  }
   0xc   :  { %s135_s19 = scalar_lea.vmem %s28_s15, 256  ;;  %p140_p6 = scmp.lt.s32.totalorder %s28_s15, %s28_s15 }
   0xd   :  { %p136_p5 = scmp.ne.s32.totalorder %s28_s15, %s135_s19  ;;  %p141_p7 = scmp.lt.s32.totalorder %s135_s19, %s135_s19 }
   0xf   :  { %p142_p8 = por %p141_p7, %p140_p6 }
  0x11   :  { %p143_p9 = pnand %p142_p8, %p136_p5 }
  0x13   :  { %146 = shalt.err (!%p143_p9)
}
  0x14   :  { %30 = dma.hbm_to_vmem [thread:$0]  %s193_s1, 256, %s28_s15, [#allocation7]  }
  0x15   :  { %147 = dma.done.wait [#allocation5], 256  }
  0x16   :  { %148 = vsyncadd [#allocation5], 4294967040 }
  0x17   :  { %149 = dma.done.wait [#allocation7], 256  }
  0x18   :  { %150 = vsyncadd [#allocation7], 4294967040  ;;  %vm41_vm0 = vcmask 7168   ;;  %v153_v0 = vmov 0.0   ;;  %v44_v1 = vld [vmem:[#allocation4] sm:$0xff]  ;;  %v45_v2 = vld [vmem:[#allocation4 + $0x8] sm:$0xff] }
  0x19   :  { %42 = vst.msk [vmem:[#allocation2] sm:$0xff] %vm41_vm0, %v153_v0  ;;  %43 = vst.msk [vmem:[#allocation3] sm:$0xff] %vm41_vm0, %v153_v0  ;;  %v46_v3 = vld [vmem:[#allocation6] sm:$0xff]  ;;  %v47_v4 = vld [vmem:[#allocation6 + $0x8] sm:$0xff] }
  0x1a   :  { %v48_v5 = vsub.f32 %v44_v1, %v46_v3  ;;  %v49_v6 = vsub.f32 %v45_v2, %v47_v4  ;;  %v76_v21 = vadd.f32 %v46_v3, %v44_v1  ;;  %v77_v22 = vadd.f32 %v47_v4, %v45_v2 }
  0x1c   :  { %v50_v7 = vand.u32 2147483647, %v48_v5  ;;  %v51_v8 = vand.u32 2147483647, %v49_v6  ;;  %v78_v24 = vadd.f32 %v77_v22, %v76_v21 }
  0x1e   :  { %103 = vrsqrt.f32 %v50_v7  ;;  %vm55_vm1 = vcmp.eq.f32.partialorder %v50_v7, inf  ;;  %v58_v10 = vand.u32 2147483648, %v50_v7  ;;  %vm57_vm2 = vcmp.eq.f32.partialorder %v50_v7, 0.0 }
  0x1f   :  { %105 = vrsqrt.f32 %v51_v8  ;;  %vm62_vm3 = vcmp.eq.f32.partialorder %v51_v8, inf  ;;  %v65_v13 = vand.u32 2147483648, %v51_v8  ;;  %vm64_vm4 = vcmp.eq.f32.partialorder %v51_v8, 0.0 }
  0x20   :  { %v52_v25 = vld [vmem:[#allocation2] sm:$0xff]  ;;  %v75_v28 = vld [vmem:[#allocation3] sm:$0xff] }
  0x2b   :  { %v104_v9 = vpop.eup %103 }
  0x2c   :  { %v106_v11 = vpop.eup %105  ;;  %v54_v12 = vmul.f32 %v104_v9, %v50_v7 }
  0x2d   :  { %v61_v14 = vmul.f32 %v106_v11, %v51_v8 }
  0x2e   :  { %v56_v15 = vsel %vm55_vm1, %v50_v7, %v54_v12 }
  0x2f   :  { %v59_v16 = vsel %vm57_vm2, %v58_v10, %v56_v15  ;;  %v63_v17 = vsel %vm62_vm3, %v51_v8, %v61_v14 }
  0x30   :  { %v66_v18 = vsel %vm64_vm4, %v65_v13, %v63_v17  ;;  %v67_v19 = vmul.f32 %v59_v16, %v50_v7 }
  0x31   :  { %v68_v20 = vmul.f32 %v66_v18, %v51_v8 }
  0x33   :  { %v69_v23 = vadd.f32 %v68_v20, %v67_v19 }
  0x35   :  { %70 = vadd.xlane.f32.xlu0 %v69_v23 }
  0x39   :  { %79 = vadd.xlane.f32.xlu0 %v78_v24 }
  0xbe   :  { %v71_v26 = vpop.xlane.xlu0 %70 }
  0xbf   :  { %v72_v27 = vadd.f32 %v71_v26, %v52_v25 }
  0xc1   :  { %74 = vst.msk [vmem:[#allocation2] sm:$0xff] %vm41_vm0, %v72_v27 }
  0xc2   :  { %v80_v29 = vpop.xlane.xlu0 %79 }
  0xc3   :  { %v81_v30 = vadd.f32 %v80_v29, %v75_v28 }
  0xc5   :  { %82 = vst.msk [vmem:[#allocation3] sm:$0xff] %vm41_vm0, %v81_v30 }
  0xc8   :  { %v86_v31 = vld [vmem:[#allocation2] sm:$0xff] }
  0xc9   :  { %87 = vst.msk [vmem:[%s194_s2] sm:$0xff] %vm41_vm0, %v86_v31 }
  0xcc   :  { %v88_v32 = vld [vmem:[#allocation3] sm:$0xff] }
  0xcd   :  { %89 = vst.msk [vmem:[%s195_s3] sm:$0xff] %vm41_vm0, %v88_v32 }
  0xce   :  { %98 = vsyncpa [#allocation5], 1 }
  0xcf   :  { %99 = vsyncpa [#allocation7], 1 }

</bundles_post_ra>
